<compile_context>
chip_gen: v7x
topology: tpu7x:2x2x1
jax: 0.10.0
libtpu: 0.0.40
codegen_flags: <defaults>
</compile_context>

<pallas_src>
import functools

import jax
import jax.numpy as jnp
import numpy as np
from jax.experimental import pallas as pl
from jax.experimental.pallas import tpu as pltpu


def gru_block_kernel(x_ref, h0_ref, wih_ref, bih_ref, whh_ref, bhn_ref,
                     wfc_ref, bfc_ref,
                     logits_ref, hfin_ref,
                     h_carry, gi_r_scr, gi_z_scr, gi_n_scr, hstk_scr):
    """One grid step = one (batch_block, T_chunk).

    x_ref:      (Tc, Bc, n_in)   time-major input chunk
    h0_ref:     (Bc, H)          initial hidden state for this batch block
    wih_ref:    (n_in, 3H)       input->gates weights (transposed), gate order [r|z|n]
    bih_ref:    (1, 3H)          folded biases [b_ir+b_hr | b_iz+b_hz | b_in]
    whh_ref:    (3, H, H)        per-gate hidden->gate weights (transposed)
    bhn_ref:    (1, H)           hidden bias of the n gate (kept separate: r*(W_hn h + b_hn))
    wfc_ref:    (H, n_out)       fc weight (transposed)
    bfc_ref:    (1, n_out)       fc bias
    logits_ref: (Tc, Bc, n_out)  per-step fc output (time-major)
    hfin_ref:   (Bc, H)          final hidden state (resident across T chunks)
    """
    Tc, Bc, n_in = x_ref.shape
    H = h0_ref.shape[1]

    # Initialize the hidden-state carry at the first T chunk of each batch block.
    @pl.when(pl.program_id(1) == 0)
    def _():
        h_carry[...] = h0_ref[...]

    # --- Bulk input->gates projection for the whole chunk (one MXU matmul). ---
    x2d = x_ref[...].reshape(Tc * Bc, n_in)
    gi_all = jnp.dot(x2d, wih_ref[...],
                     preferred_element_type=jnp.float32) + bih_ref[...]
    # Split gates once per chunk; per-step access becomes a free leading-dim index.
    gi_r_scr[...] = gi_all[:, 0 * H:1 * H].reshape(Tc, Bc, H)
    gi_z_scr[...] = gi_all[:, 1 * H:2 * H].reshape(Tc, Bc, H)
    gi_n_scr[...] = gi_all[:, 2 * H:3 * H].reshape(Tc, Bc, H)

    # Hoist loop-invariant operands (weights / broadcast bias) out of the loop.
    whh_r = whh_ref[0]
    whh_z = whh_ref[1]
    whh_n = whh_ref[2]
    bhn = jnp.broadcast_to(bhn_ref[...], (Bc, H))

    def step(t, h):
        gh_r = jnp.dot(h, whh_r, preferred_element_type=jnp.float32)
        gh_z = jnp.dot(h, whh_z, preferred_element_type=jnp.float32)
        gh_n = jnp.dot(h, whh_n, preferred_element_type=jnp.float32) + bhn
        r = jax.nn.sigmoid(gi_r_scr[t] + gh_r)
        z = jax.nn.sigmoid(gi_z_scr[t] + gh_z)
        n = jnp.tanh(gi_n_scr[t] + r * gh_n)
        h_new = (1.0 - z) * n + z * h
        hstk_scr[t] = h_new
        return h_new

    h_last = jax.lax.fori_loop(0, Tc, step, h_carry[...], unroll=True)
    h_carry[...] = h_last
    hfin_ref[...] = h_last  # resident across t; last chunk's value is written back

    # --- FC head: one bulk matmul per chunk (off the serial per-step path). ---
    h2d = hstk_scr[...].reshape(Tc * Bc, H)
    logits_ref[...] = (jnp.dot(h2d, wfc_ref[...],
                               preferred_element_type=jnp.float32)
                       + bfc_ref[...]).reshape(Tc, Bc, n_out)


def rnn_regressor_forward(X, init_state, params, *, t_chunk=4):
    """X: (B, T, n_in) batch_first; init_state: (1, B, H) (num_layers=1).

    Returns (logits (B*T, n_out), final_state (1, B, H)) — same as the
    PyTorch RNNRegressor.forward.
    """
    B, T, n_in = X.shape
    H = init_state.shape[-1]
    n_out = params["w_fc_t"].shape[1]

    # Pad batch to a f32 sublane multiple (8); padded rows are zero and never
    # mix with real rows (all ops are batched row-wise), they are sliced off.
    Bc = min(max(8, -(-B // 8) * 8), 128)
    Bp = -(-B // Bc) * Bc
    Tc = t_chunk if (T % t_chunk == 0) else T

    x_tm = jnp.transpose(X, (1, 0, 2)).astype(jnp.float32)        # (T, B, n_in)
    x_tm = jnp.pad(x_tm, ((0, 0), (0, Bp - B), (0, 0)))
    h0 = jnp.pad(init_state[0].astype(jnp.float32), ((0, Bp - B), (0, 0)))

    grid = (Bp // Bc, T // Tc)

    grid_spec = pltpu.PrefetchScalarGridSpec(
        num_scalar_prefetch=0,
        grid=grid,
        in_specs=[
            pl.BlockSpec((Tc, Bc, n_in), lambda b, t: (t, b, 0)),    # x (streamed)
            pl.BlockSpec((Bc, H), lambda b, t: (b, 0)),              # h0
            pl.BlockSpec((n_in, 3 * H), lambda b, t: (0, 0)),        # w_ih
            pl.BlockSpec((1, 3 * H), lambda b, t: (0, 0)),           # folded biases
            pl.BlockSpec((3, H, H), lambda b, t: (0, 0, 0)),         # per-gate w_hh
            pl.BlockSpec((1, H), lambda b, t: (0, 0)),               # b_hn
            pl.BlockSpec((H, n_out), lambda b, t: (0, 0)),           # w_fc
            pl.BlockSpec((1, n_out), lambda b, t: (0, 0)),           # b_fc
        ],
        out_specs=(
            pl.BlockSpec((Tc, Bc, n_out), lambda b, t: (t, b, 0)),   # logits (streamed)
            pl.BlockSpec((Bc, H), lambda b, t: (b, 0)),              # final hidden
        ),
        scratch_shapes=[
            pltpu.VMEM((Bc, H), jnp.float32),        # hidden-state carry
            pltpu.VMEM((Tc, Bc, H), jnp.float32),    # gi_r
            pltpu.VMEM((Tc, Bc, H), jnp.float32),    # gi_z
            pltpu.VMEM((Tc, Bc, H), jnp.float32),    # gi_n
            pltpu.VMEM((Tc, Bc, H), jnp.float32),    # hidden stack for FC head
        ],
    )

    logits_tm, h_final = pl.pallas_call(
        gru_block_kernel,
        out_shape=(
            jax.ShapeDtypeStruct((T, Bp, n_out), jnp.float32),
            jax.ShapeDtypeStruct((Bp, H), jnp.float32),
        ),
        grid_spec=grid_spec,
        compiler_params=pltpu.CompilerParams(
            dimension_semantics=("parallel", "arbitrary"),
            vmem_limit_bytes=32 * 1024 * 1024,
        ),
    )(x_tm, h0, params["w_ih_t"], params["b_i_fold"], params["w_hh_g"],
      params["b_hn"], params["w_fc_t"], params["b_fc"])

    # PyTorch flattening order: row = b*T + t (logits tensor is tiny, n_out lanes).
    logits = jnp.transpose(logits_tm[:, :B, :], (1, 0, 2)).reshape(B * T, n_out)
    final_state = h_final[:B][None]
    return logits, final_state


# ----------------------------- parameters / reference -----------------------------

def init_raw_params(key, n_in, n_out, H):
    """torch.nn.GRU / Linear layout, uniform(+-1/sqrt(H)) like PyTorch defaults."""
    ks = jax.random.split(key, 6)
    bound = 1.0 / np.sqrt(H)
    return {
        "w_ih": jax.random.uniform(ks[0], (3 * H, n_in), jnp.float32, -bound, bound),
        "w_hh": jax.random.uniform(ks[1], (3 * H, H), jnp.float32, -bound, bound),
        "b_ih": jax.random.uniform(ks[2], (3 * H,), jnp.float32, -bound, bound),
        "b_hh": jax.random.uniform(ks[3], (3 * H,), jnp.float32, -bound, bound),
        "w_fc": jax.random.uniform(ks[4], (n_out, H), jnp.float32, -bound, bound),
        "b_fc": jax.random.uniform(ks[5], (n_out,), jnp.float32, -bound, bound),
    }


def prepare_params(raw, H):
    """Convert torch-layout GRU/Linear weights to the kernel layout (done once)."""
    b_ih, b_hh, w_hh = raw["b_ih"], raw["b_hh"], raw["w_hh"]
    # r/z gates can take b_ih + b_hh folded into the bulk projection; the n gate
    # keeps b_hn separate (it is multiplied by r inside the cell).
    b_fold = jnp.concatenate([
        b_ih[0 * H:1 * H] + b_hh[0 * H:1 * H],
        b_ih[1 * H:2 * H] + b_hh[1 * H:2 * H],
        b_ih[2 * H:3 * H],
    ])[None, :]
    w_hh_g = jnp.stack([w_hh[0 * H:1 * H].T,
                        w_hh[1 * H:2 * H].T,
                        w_hh[2 * H:3 * H].T])          # (3, H, H)
    return {
        "w_ih_t": raw["w_ih"].T,          # (n_in, 3H)
        "b_i_fold": b_fold,               # (1, 3H)
        "w_hh_g": w_hh_g,                 # (3, H, H)
        "b_hn": b_hh[2 * H:3 * H][None],  # (1, H)
        "w_fc_t": raw["w_fc"].T,          # (H, n_out)
        "b_fc": raw["b_fc"][None],        # (1, n_out)
    }


def reference_forward(X, init_state, raw):
    """Pure-JAX reference implementing torch.nn.GRU + Linear equations."""
    B, T, _ = X.shape
    H = init_state.shape[-1]
    wih, whh, bih, bhh = raw["w_ih"], raw["w_hh"], raw["b_ih"], raw["b_hh"]
    h = init_state[0]
    outs = []
    for t in range(T):
        xt = X[:, t, :]
        gi = xt @ wih.T + bih
        gh = h @ whh.T + bhh
        r = jax.nn.sigmoid(gi[:, :H] + gh[:, :H])
        z = jax.nn.sigmoid(gi[:, H:2 * H] + gh[:, H:2 * H])
        n = jnp.tanh(gi[:, 2 * H:] + r * gh[:, 2 * H:])
        h = (1.0 - z) * n + z * h
        outs.append(h)
    rnn_out = jnp.stack(outs, axis=1)                               # (B, T, H)
    logits = rnn_out.reshape(-1, H) @ raw["w_fc"].T + raw["b_fc"]
    return logits, h[None]


if __name__ == "__main__":
    B, T, n_in, H, n_out = 2, 8, 4, 32, 1

    key = jax.random.PRNGKey(0)
    k_x, k_h, k_p = jax.random.split(key, 3)
    X = jax.random.normal(k_x, (B, T, n_in), jnp.float32)
    init_state = jax.random.normal(k_h, (1, B, H), jnp.float32)
    raw = init_raw_params(k_p, n_in, n_out, H)
    params = prepare_params(raw, H)

    fwd = jax.jit(functools.partial(rnn_regressor_forward, t_chunk=4))
    logits, final_state = jax.block_until_ready(fwd(X, init_state, params))

    ref_logits, ref_final = reference_forward(X, init_state, raw)
    np.testing.assert_allclose(np.asarray(logits), np.asarray(ref_logits),
                               rtol=1e-5, atol=1e-5)
    np.testing.assert_allclose(np.asarray(final_state), np.asarray(ref_final),
                               rtol=1e-5, atol=1e-5)

    assert logits.shape == (B * T, n_out)
    assert final_state.shape == (1, B, H)
    print("KERNEL_OK")
</pallas_src>

<mosaic_0001>
module attributes {stable_mosaic.version = 11 : i64} {
  func.func @gru_block_kernel(%arg0: i32, %arg1: i32, %arg2: memref<4x8x4xf32, #tpu.memory_space<vmem>>, %arg3: memref<8x32xf32, #tpu.memory_space<vmem>>, %arg4: memref<4x96xf32, #tpu.memory_space<vmem>>, %arg5: memref<1x96xf32, #tpu.memory_space<vmem>>, %arg6: memref<3x32x32xf32, #tpu.memory_space<vmem>>, %arg7: memref<1x32xf32, #tpu.memory_space<vmem>>, %arg8: memref<32x1xf32, #tpu.memory_space<vmem>>, %arg9: memref<1x1xf32, #tpu.memory_space<vmem>>, %arg10: memref<4x8x1xf32, #tpu.memory_space<vmem>>, %arg11: memref<8x32xf32, #tpu.memory_space<vmem>>, %arg12: memref<8x32xf32, #tpu.memory_space<vmem>>, %arg13: memref<4x8x32xf32, #tpu.memory_space<vmem>>, %arg14: memref<4x8x32xf32, #tpu.memory_space<vmem>>, %arg15: memref<4x8x32xf32, #tpu.memory_space<vmem>>, %arg16: memref<4x8x32xf32, #tpu.memory_space<vmem>>) attributes {dimension_semantics = [#tpu.dimension_semantics<parallel>, #tpu.dimension_semantics<arbitrary>], iteration_bounds = array<i64: 1, 2>, scalar_prefetch = 0 : i64, scratch_operands = 5 : i64, tpu.core_type = #tpu.core_type<tc>, window_params = [{transform_indices = @transform_0, window_bounds = array<i64: 4, 8, 4>}, {transform_indices = @transform_1, window_bounds = array<i64: 8, 32>}, {pipeline_mode = #tpu.pipeline_mode<synchronous>, transform_indices = @transform_2, window_bounds = array<i64: 4, 96>}, {pipeline_mode = #tpu.pipeline_mode<synchronous>, transform_indices = @transform_3, window_bounds = array<i64: 1, 96>}, {pipeline_mode = #tpu.pipeline_mode<synchronous>, transform_indices = @transform_4, window_bounds = array<i64: 3, 32, 32>}, {pipeline_mode = #tpu.pipeline_mode<synchronous>, transform_indices = @transform_5, window_bounds = array<i64: 1, 32>}, {pipeline_mode = #tpu.pipeline_mode<synchronous>, transform_indices = @transform_6, window_bounds = array<i64: 32, 1>}, {pipeline_mode = #tpu.pipeline_mode<synchronous>, transform_indices = @transform_7, window_bounds = array<i64: 1, 1>}, {transform_indices = @transform_8, window_bounds = array<i64: 4, 8, 1>}, {transform_indices = @transform_9, window_bounds = array<i64: 8, 32>}]} {
    %c0_i32 = arith.constant 0 : i32
    %0 = arith.cmpi eq, %arg1, %c0_i32 : i32
    %1 = arith.extui %0 : i1 to i32
    %c0_i32_0 = arith.constant 0 : i32
    %2 = arith.cmpi ne, %1, %c0_i32_0 : i32
    scf.if %2 {
      %c0_99 = arith.constant 0 : index
      %c0_100 = arith.constant 0 : index
      %188 = vector.load %arg3[%c0_99, %c0_100] : memref<8x32xf32, #tpu.memory_space<vmem>>, vector<8x32xf32>
      %c0_101 = arith.constant 0 : index
      %c0_102 = arith.constant 0 : index
      %189 = vector.load %arg12[%c0_101, %c0_102] : memref<8x32xf32, #tpu.memory_space<vmem>>, vector<8x32xf32>
      tpu.vector_store %arg12[%c0_101, %c0_102], %188 {strides = array<i32>} : memref<8x32xf32, #tpu.memory_space<vmem>>, vector<8x32xf32>,
    } else {
    }
    %c0 = arith.constant 0 : index
    %c0_1 = arith.constant 0 : index
    %c0_2 = arith.constant 0 : index
    %3 = vector.load %arg2[%c0, %c0_1, %c0_2] : memref<4x8x4xf32, #tpu.memory_space<vmem>>, vector<4x8x4xf32>
    %4 = vector.shape_cast %3 : vector<4x8x4xf32> to vector<32x4xf32>
    %c0_3 = arith.constant 0 : index
    %c0_4 = arith.constant 0 : index
    %5 = vector.load %arg4[%c0_3, %c0_4] : memref<4x96xf32, #tpu.memory_space<vmem>>, vector<4x96xf32>
    %cst = arith.constant dense<0.000000e+00> : vector<32x96xf32>
    %6 = tpu.matmul %4, %5, %cst {dimension_numbers = #tpu.dot_dimension_numbers<[1], [0], [0], [1], [0, 0, 1, 1], [], []>} : vector<32x4xf32>, vector<4x96xf32>, vector<32x96xf32> -> vector<32x96xf32>
    %c0_5 = arith.constant 0 : index
    %c0_6 = arith.constant 0 : index
    %7 = vector.load %arg5[%c0_5, %c0_6] : memref<1x96xf32, #tpu.memory_space<vmem>>, vector<1x96xf32>
    %8 = vector.broadcast %7 : vector<1x96xf32> to vector<32x96xf32>
    %9 = arith.addf %6, %8 : vector<32x96xf32>
    %10 = vector.extract_strided_slice %9 {offsets = [0, 0], sizes = [32, 32], strides = [1, 1]} : vector<32x96xf32> to vector<32x32xf32>
    %11 = vector.shape_cast %10 : vector<32x32xf32> to vector<4x8x32xf32>
    %c0_7 = arith.constant 0 : index
    %c0_8 = arith.constant 0 : index
    %c0_9 = arith.constant 0 : index
    %12 = vector.load %arg13[%c0_7, %c0_8, %c0_9] : memref<4x8x32xf32, #tpu.memory_space<vmem>>, vector<4x8x32xf32>
    tpu.vector_store %arg13[%c0_7, %c0_8, %c0_9], %11 {strides = array<i32>} : memref<4x8x32xf32, #tpu.memory_space<vmem>>, vector<4x8x32xf32>,
    %13 = vector.extract_strided_slice %9 {offsets = [0, 32], sizes = [32, 32], strides = [1, 1]} : vector<32x96xf32> to vector<32x32xf32>
    %14 = vector.shape_cast %13 : vector<32x32xf32> to vector<4x8x32xf32>
    %c0_10 = arith.constant 0 : index
    %c0_11 = arith.constant 0 : index
    %c0_12 = arith.constant 0 : index
    %15 = vector.load %arg14[%c0_10, %c0_11, %c0_12] : memref<4x8x32xf32, #tpu.memory_space<vmem>>, vector<4x8x32xf32>
    tpu.vector_store %arg14[%c0_10, %c0_11, %c0_12], %14 {strides = array<i32>} : memref<4x8x32xf32, #tpu.memory_space<vmem>>, vector<4x8x32xf32>,
    %16 = vector.extract_strided_slice %9 {offsets = [0, 64], sizes = [32, 32], strides = [1, 1]} : vector<32x96xf32> to vector<32x32xf32>
    %17 = vector.shape_cast %16 : vector<32x32xf32> to vector<4x8x32xf32>
    %c0_13 = arith.constant 0 : index
    %c0_14 = arith.constant 0 : index
    %c0_15 = arith.constant 0 : index
    %18 = vector.load %arg15[%c0_13, %c0_14, %c0_15] : memref<4x8x32xf32, #tpu.memory_space<vmem>>, vector<4x8x32xf32>
    tpu.vector_store %arg15[%c0_13, %c0_14, %c0_15], %17 {strides = array<i32>} : memref<4x8x32xf32, #tpu.memory_space<vmem>>, vector<4x8x32xf32>,
    %c0_16 = arith.constant 0 : index
    %c0_17 = arith.constant 0 : index
    %c0_18 = arith.constant 0 : index
    %19 = vector.load %arg6[%c0_16, %c0_17, %c0_18] : memref<3x32x32xf32, #tpu.memory_space<vmem>>, vector<1x32x32xf32>
    %20 = vector.shape_cast %19 : vector<1x32x32xf32> to vector<32x32xf32>
    %c1 = arith.constant 1 : index
    %c0_19 = arith.constant 0 : index
    %c0_20 = arith.constant 0 : index
    %21 = vector.load %arg6[%c1, %c0_19, %c0_20] : memref<3x32x32xf32, #tpu.memory_space<vmem>>, vector<1x32x32xf32>
    %22 = vector.shape_cast %21 : vector<1x32x32xf32> to vector<32x32xf32>
    %c2 = arith.constant 2 : index
    %c0_21 = arith.constant 0 : index
    %c0_22 = arith.constant 0 : index
    %23 = vector.load %arg6[%c2, %c0_21, %c0_22] : memref<3x32x32xf32, #tpu.memory_space<vmem>>, vector<1x32x32xf32>
    %24 = vector.shape_cast %23 : vector<1x32x32xf32> to vector<32x32xf32>
    %c0_23 = arith.constant 0 : index
    %c0_24 = arith.constant 0 : index
    %25 = vector.load %arg7[%c0_23, %c0_24] : memref<1x32xf32, #tpu.memory_space<vmem>>, vector<1x32xf32>
    %26 = vector.shape_cast %25 : vector<1x32xf32> to vector<1x32xf32>
    %27 = vector.broadcast %26 : vector<1x32xf32> to vector<8x32xf32>
    %c0_25 = arith.constant 0 : index
    %c0_26 = arith.constant 0 : index
    %28 = vector.load %arg12[%c0_25, %c0_26] : memref<8x32xf32, #tpu.memory_space<vmem>>, vector<8x32xf32>
    %c0_i32_27 = arith.constant 0 : i32
    %cst_28 = arith.constant dense<0.000000e+00> : vector<8x32xf32>
    %29 = tpu.matmul %28, %20, %cst_28 {dimension_numbers = #tpu.dot_dimension_numbers<[1], [0], [0], [1], [0, 0, 1, 1], [], []>} : vector<8x32xf32>, vector<32x32xf32>, vector<8x32xf32> -> vector<8x32xf32>
    %cst_29 = arith.constant dense<0.000000e+00> : vector<8x32xf32>
    %30 = tpu.matmul %28, %22, %cst_29 {dimension_numbers = #tpu.dot_dimension_numbers<[1], [0], [0], [1], [0, 0, 1, 1], [], []>} : vector<8x32xf32>, vector<32x32xf32>, vector<8x32xf32> -> vector<8x32xf32>
    %cst_30 = arith.constant dense<0.000000e+00> : vector<8x32xf32>
    %31 = tpu.matmul %28, %24, %cst_30 {dimension_numbers = #tpu.dot_dimension_numbers<[1], [0], [0], [1], [0, 0, 1, 1], [], []>} : vector<8x32xf32>, vector<32x32xf32>, vector<8x32xf32> -> vector<8x32xf32>
    %32 = arith.addf %31, %27 : vector<8x32xf32>
    %33 = arith.index_cast %c0_i32_27 : i32 to index
    %c0_31 = arith.constant 0 : index
    %c0_32 = arith.constant 0 : index
    %34 = vector.load %arg13[%33, %c0_31, %c0_32] : memref<4x8x32xf32, #tpu.memory_space<vmem>>, vector<1x8x32xf32>
    %35 = vector.shape_cast %34 : vector<1x8x32xf32> to vector<8x32xf32>
    %36 = arith.addf %35, %29 : vector<8x32xf32>
    %37 = arith.negf %36 : vector<8x32xf32>
    %38 = math.exp %37 : vector<8x32xf32>
    %cst_33 = arith.constant 1.000000e+00 : f32
    %39 = vector.broadcast %cst_33 : f32 to vector<8x32xf32>
    %40 = arith.addf %39, %38 : vector<8x32xf32>
    %41 = arith.divf %39, %40 : vector<8x32xf32>
    %42 = arith.index_cast %c0_i32_27 : i32 to index
    %c0_34 = arith.constant 0 : index
    %c0_35 = arith.constant 0 : index
    %43 = vector.load %arg14[%42, %c0_34, %c0_35] : memref<4x8x32xf32, #tpu.memory_space<vmem>>, vector<1x8x32xf32>
    %44 = vector.shape_cast %43 : vector<1x8x32xf32> to vector<8x32xf32>
    %45 = arith.addf %44, %30 : vector<8x32xf32>
    %46 = arith.negf %45 : vector<8x32xf32>
    %47 = math.exp %46 : vector<8x32xf32>
    %cst_36 = arith.constant 1.000000e+00 : f32
    %48 = vector.broadcast %cst_36 : f32 to vector<8x32xf32>
    %49 = arith.addf %48, %47 : vector<8x32xf32>
    %50 = arith.divf %48, %49 : vector<8x32xf32>
    %51 = arith.index_cast %c0_i32_27 : i32 to index
    %c0_37 = arith.constant 0 : index
    %c0_38 = arith.constant 0 : index
    %52 = vector.load %arg15[%51, %c0_37, %c0_38] : memref<4x8x32xf32, #tpu.memory_space<vmem>>, vector<1x8x32xf32>
    %53 = vector.shape_cast %52 : vector<1x8x32xf32> to vector<8x32xf32>
    %54 = arith.mulf %41, %32 : vector<8x32xf32>
    %55 = arith.addf %53, %54 : vector<8x32xf32>
    %56 = math.tanh %55 : vector<8x32xf32>
    %cst_39 = arith.constant 1.000000e+00 : f32
    %57 = vector.broadcast %cst_39 : f32 to vector<8x32xf32>
    %58 = arith.subf %57, %50 : vector<8x32xf32>
    %59 = arith.mulf %58, %56 : vector<8x32xf32>
    %60 = arith.mulf %50, %28 : vector<8x32xf32>
    %61 = arith.addf %59, %60 : vector<8x32xf32>
    %62 = arith.index_cast %c0_i32_27 : i32 to index
    %c0_40 = arith.constant 0 : index
    %c0_41 = arith.constant 0 : index
    %63 = vector.load %arg16[%62, %c0_40, %c0_41] : memref<4x8x32xf32, #tpu.memory_space<vmem>>, vector<1x8x32xf32>
    %64 = vector.shape_cast %63 : vector<1x8x32xf32> to vector<8x32xf32>
    %65 = vector.shape_cast %61 : vector<8x32xf32> to vector<1x8x32xf32>
    tpu.vector_store %arg16[%62, %c0_40, %c0_41], %65 {strides = array<i32>} : memref<4x8x32xf32, #tpu.memory_space<vmem>>, vector<1x8x32xf32>,
    %c1_i32 = arith.constant 1 : i32
    %cst_42 = arith.constant dense<0.000000e+00> : vector<8x32xf32>
    %66 = tpu.matmul %61, %20, %cst_42 {dimension_numbers = #tpu.dot_dimension_numbers<[1], [0], [0], [1], [0, 0, 1, 1], [], []>} : vector<8x32xf32>, vector<32x32xf32>, vector<8x32xf32> -> vector<8x32xf32>
    %cst_43 = arith.constant dense<0.000000e+00> : vector<8x32xf32>
    %67 = tpu.matmul %61, %22, %cst_43 {dimension_numbers = #tpu.dot_dimension_numbers<[1], [0], [0], [1], [0, 0, 1, 1], [], []>} : vector<8x32xf32>, vector<32x32xf32>, vector<8x32xf32> -> vector<8x32xf32>
    %cst_44 = arith.constant dense<0.000000e+00> : vector<8x32xf32>
    %68 = tpu.matmul %61, %24, %cst_44 {dimension_numbers = #tpu.dot_dimension_numbers<[1], [0], [0], [1], [0, 0, 1, 1], [], []>} : vector<8x32xf32>, vector<32x32xf32>, vector<8x32xf32> -> vector<8x32xf32>
    %69 = arith.addf %68, %27 : vector<8x32xf32>
    %70 = arith.index_cast %c1_i32 : i32 to index
    %c0_45 = arith.constant 0 : index
    %c0_46 = arith.constant 0 : index
    %71 = vector.load %arg13[%70, %c0_45, %c0_46] : memref<4x8x32xf32, #tpu.memory_space<vmem>>, vector<1x8x32xf32>
    %72 = vector.shape_cast %71 : vector<1x8x32xf32> to vector<8x32xf32>
    %73 = arith.addf %72, %66 : vector<8x32xf32>
    %74 = arith.negf %73 : vector<8x32xf32>
    %75 = math.exp %74 : vector<8x32xf32>
    %cst_47 = arith.constant 1.000000e+00 : f32
    %76 = vector.broadcast %cst_47 : f32 to vector<8x32xf32>
    %77 = arith.addf %76, %75 : vector<8x32xf32>
    %78 = arith.divf %76, %77 : vector<8x32xf32>
    %79 = arith.index_cast %c1_i32 : i32 to index
    %c0_48 = arith.constant 0 : index
    %c0_49 = arith.constant 0 : index
    %80 = vector.load %arg14[%79, %c0_48, %c0_49] : memref<4x8x32xf32, #tpu.memory_space<vmem>>, vector<1x8x32xf32>
    %81 = vector.shape_cast %80 : vector<1x8x32xf32> to vector<8x32xf32>
    %82 = arith.addf %81, %67 : vector<8x32xf32>
    %83 = arith.negf %82 : vector<8x32xf32>
    %84 = math.exp %83 : vector<8x32xf32>
    %cst_50 = arith.constant 1.000000e+00 : f32
    %85 = vector.broadcast %cst_50 : f32 to vector<8x32xf32>
    %86 = arith.addf %85, %84 : vector<8x32xf32>
    %87 = arith.divf %85, %86 : vector<8x32xf32>
    %88 = arith.index_cast %c1_i32 : i32 to index
    %c0_51 = arith.constant 0 : index
    %c0_52 = arith.constant 0 : index
    %89 = vector.load %arg15[%88, %c0_51, %c0_52] : memref<4x8x32xf32, #tpu.memory_space<vmem>>, vector<1x8x32xf32>
    %90 = vector.shape_cast %89 : vector<1x8x32xf32> to vector<8x32xf32>
    %91 = arith.mulf %78, %69 : vector<8x32xf32>
    %92 = arith.addf %90, %91 : vector<8x32xf32>
    %93 = math.tanh %92 : vector<8x32xf32>
    %cst_53 = arith.constant 1.000000e+00 : f32
    %94 = vector.broadcast %cst_53 : f32 to vector<8x32xf32>
    %95 = arith.subf %94, %87 : vector<8x32xf32>
    %96 = arith.mulf %95, %93 : vector<8x32xf32>
    %97 = arith.mulf %87, %61 : vector<8x32xf32>
    %98 = arith.addf %96, %97 : vector<8x32xf32>
    %99 = arith.index_cast %c1_i32 : i32 to index
    %c0_54 = arith.constant 0 : index
    %c0_55 = arith.constant 0 : index
    %100 = vector.load %arg16[%99, %c0_54, %c0_55] : memref<4x8x32xf32, #tpu.memory_space<vmem>>, vector<1x8x32xf32>
    %101 = vector.shape_cast %100 : vector<1x8x32xf32> to vector<8x32xf32>
    %102 = vector.shape_cast %98 : vector<8x32xf32> to vector<1x8x32xf32>
    tpu.vector_store %arg16[%99, %c0_54, %c0_55], %102 {strides = array<i32>} : memref<4x8x32xf32, #tpu.memory_space<vmem>>, vector<1x8x32xf32>,
    %c2_i32 = arith.constant 2 : i32
    %cst_56 = arith.constant dense<0.000000e+00> : vector<8x32xf32>
    %103 = tpu.matmul %98, %20, %cst_56 {dimension_numbers = #tpu.dot_dimension_numbers<[1], [0], [0], [1], [0, 0, 1, 1], [], []>} : vector<8x32xf32>, vector<32x32xf32>, vector<8x32xf32> -> vector<8x32xf32>
    %cst_57 = arith.constant dense<0.000000e+00> : vector<8x32xf32>
    %104 = tpu.matmul %98, %22, %cst_57 {dimension_numbers = #tpu.dot_dimension_numbers<[1], [0], [0], [1], [0, 0, 1, 1], [], []>} : vector<8x32xf32>, vector<32x32xf32>, vector<8x32xf32> -> vector<8x32xf32>
    %cst_58 = arith.constant dense<0.000000e+00> : vector<8x32xf32>
    %105 = tpu.matmul %98, %24, %cst_58 {dimension_numbers = #tpu.dot_dimension_numbers<[1], [0], [0], [1], [0, 0, 1, 1], [], []>} : vector<8x32xf32>, vector<32x32xf32>, vector<8x32xf32> -> vector<8x32xf32>
    %106 = arith.addf %105, %27 : vector<8x32xf32>
    %107 = arith.index_cast %c2_i32 : i32 to index
    %c0_59 = arith.constant 0 : index
    %c0_60 = arith.constant 0 : index
    %108 = vector.load %arg13[%107, %c0_59, %c0_60] : memref<4x8x32xf32, #tpu.memory_space<vmem>>, vector<1x8x32xf32>
    %109 = vector.shape_cast %108 : vector<1x8x32xf32> to vector<8x32xf32>
    %110 = arith.addf %109, %103 : vector<8x32xf32>
    %111 = arith.negf %110 : vector<8x32xf32>
    %112 = math.exp %111 : vector<8x32xf32>
    %cst_61 = arith.constant 1.000000e+00 : f32
    %113 = vector.broadcast %cst_61 : f32 to vector<8x32xf32>
    %114 = arith.addf %113, %112 : vector<8x32xf32>
    %115 = arith.divf %113, %114 : vector<8x32xf32>
    %116 = arith.index_cast %c2_i32 : i32 to index
    %c0_62 = arith.constant 0 : index
    %c0_63 = arith.constant 0 : index
    %117 = vector.load %arg14[%116, %c0_62, %c0_63] : memref<4x8x32xf32, #tpu.memory_space<vmem>>, vector<1x8x32xf32>
    %118 = vector.shape_cast %117 : vector<1x8x32xf32> to vector<8x32xf32>
    %119 = arith.addf %118, %104 : vector<8x32xf32>
    %120 = arith.negf %119 : vector<8x32xf32>
    %121 = math.exp %120 : vector<8x32xf32>
    %cst_64 = arith.constant 1.000000e+00 : f32
    %122 = vector.broadcast %cst_64 : f32 to vector<8x32xf32>
    %123 = arith.addf %122, %121 : vector<8x32xf32>
    %124 = arith.divf %122, %123 : vector<8x32xf32>
    %125 = arith.index_cast %c2_i32 : i32 to index
    %c0_65 = arith.constant 0 : index
    %c0_66 = arith.constant 0 : index
    %126 = vector.load %arg15[%125, %c0_65, %c0_66] : memref<4x8x32xf32, #tpu.memory_space<vmem>>, vector<1x8x32xf32>
    %127 = vector.shape_cast %126 : vector<1x8x32xf32> to vector<8x32xf32>
    %128 = arith.mulf %115, %106 : vector<8x32xf32>
    %129 = arith.addf %127, %128 : vector<8x32xf32>
    %130 = math.tanh %129 : vector<8x32xf32>
    %cst_67 = arith.constant 1.000000e+00 : f32
    %131 = vector.broadcast %cst_67 : f32 to vector<8x32xf32>
    %132 = arith.subf %131, %124 : vector<8x32xf32>
    %133 = arith.mulf %132, %130 : vector<8x32xf32>
    %134 = arith.mulf %124, %98 : vector<8x32xf32>
    %135 = arith.addf %133, %134 : vector<8x32xf32>
    %136 = arith.index_cast %c2_i32 : i32 to index
    %c0_68 = arith.constant 0 : index
    %c0_69 = arith.constant 0 : index
    %137 = vector.load %arg16[%136, %c0_68, %c0_69] : memref<4x8x32xf32, #tpu.memory_space<vmem>>, vector<1x8x32xf32>
    %138 = vector.shape_cast %137 : vector<1x8x32xf32> to vector<8x32xf32>
    %139 = vector.shape_cast %135 : vector<8x32xf32> to vector<1x8x32xf32>
    tpu.vector_store %arg16[%136, %c0_68, %c0_69], %139 {strides = array<i32>} : memref<4x8x32xf32, #tpu.memory_space<vmem>>, vector<1x8x32xf32>,
    %c3_i32 = arith.constant 3 : i32
    %cst_70 = arith.constant dense<0.000000e+00> : vector<8x32xf32>
    %140 = tpu.matmul %135, %20, %cst_70 {dimension_numbers = #tpu.dot_dimension_numbers<[1], [0], [0], [1], [0, 0, 1, 1], [], []>} : vector<8x32xf32>, vector<32x32xf32>, vector<8x32xf32> -> vector<8x32xf32>
    %cst_71 = arith.constant dense<0.000000e+00> : vector<8x32xf32>
    %141 = tpu.matmul %135, %22, %cst_71 {dimension_numbers = #tpu.dot_dimension_numbers<[1], [0], [0], [1], [0, 0, 1, 1], [], []>} : vector<8x32xf32>, vector<32x32xf32>, vector<8x32xf32> -> vector<8x32xf32>
    %cst_72 = arith.constant dense<0.000000e+00> : vector<8x32xf32>
    %142 = tpu.matmul %135, %24, %cst_72 {dimension_numbers = #tpu.dot_dimension_numbers<[1], [0], [0], [1], [0, 0, 1, 1], [], []>} : vector<8x32xf32>, vector<32x32xf32>, vector<8x32xf32> -> vector<8x32xf32>
    %143 = arith.addf %142, %27 : vector<8x32xf32>
    %144 = arith.index_cast %c3_i32 : i32 to index
    %c0_73 = arith.constant 0 : index
    %c0_74 = arith.constant 0 : index
    %145 = vector.load %arg13[%144, %c0_73, %c0_74] : memref<4x8x32xf32, #tpu.memory_space<vmem>>, vector<1x8x32xf32>
    %146 = vector.shape_cast %145 : vector<1x8x32xf32> to vector<8x32xf32>
    %147 = arith.addf %146, %140 : vector<8x32xf32>
    %148 = arith.negf %147 : vector<8x32xf32>
    %149 = math.exp %148 : vector<8x32xf32>
    %cst_75 = arith.constant 1.000000e+00 : f32
    %150 = vector.broadcast %cst_75 : f32 to vector<8x32xf32>
    %151 = arith.addf %150, %149 : vector<8x32xf32>
    %152 = arith.divf %150, %151 : vector<8x32xf32>
    %153 = arith.index_cast %c3_i32 : i32 to index
    %c0_76 = arith.constant 0 : index
    %c0_77 = arith.constant 0 : index
    %154 = vector.load %arg14[%153, %c0_76, %c0_77] : memref<4x8x32xf32, #tpu.memory_space<vmem>>, vector<1x8x32xf32>
    %155 = vector.shape_cast %154 : vector<1x8x32xf32> to vector<8x32xf32>
    %156 = arith.addf %155, %141 : vector<8x32xf32>
    %157 = arith.negf %156 : vector<8x32xf32>
    %158 = math.exp %157 : vector<8x32xf32>
    %cst_78 = arith.constant 1.000000e+00 : f32
    %159 = vector.broadcast %cst_78 : f32 to vector<8x32xf32>
    %160 = arith.addf %159, %158 : vector<8x32xf32>
    %161 = arith.divf %159, %160 : vector<8x32xf32>
    %162 = arith.index_cast %c3_i32 : i32 to index
    %c0_79 = arith.constant 0 : index
    %c0_80 = arith.constant 0 : index
    %163 = vector.load %arg15[%162, %c0_79, %c0_80] : memref<4x8x32xf32, #tpu.memory_space<vmem>>, vector<1x8x32xf32>
    %164 = vector.shape_cast %163 : vector<1x8x32xf32> to vector<8x32xf32>
    %165 = arith.mulf %152, %143 : vector<8x32xf32>
    %166 = arith.addf %164, %165 : vector<8x32xf32>
    %167 = math.tanh %166 : vector<8x32xf32>
    %cst_81 = arith.constant 1.000000e+00 : f32
    %168 = vector.broadcast %cst_81 : f32 to vector<8x32xf32>
    %169 = arith.subf %168, %161 : vector<8x32xf32>
    %170 = arith.mulf %169, %167 : vector<8x32xf32>
    %171 = arith.mulf %161, %135 : vector<8x32xf32>
    %172 = arith.addf %170, %171 : vector<8x32xf32>
    %173 = arith.index_cast %c3_i32 : i32 to index
    %c0_82 = arith.constant 0 : index
    %c0_83 = arith.constant 0 : index
    %174 = vector.load %arg16[%173, %c0_82, %c0_83] : memref<4x8x32xf32, #tpu.memory_space<vmem>>, vector<1x8x32xf32>
    %175 = vector.shape_cast %174 : vector<1x8x32xf32> to vector<8x32xf32>
    %176 = vector.shape_cast %172 : vector<8x32xf32> to vector<1x8x32xf32>
    tpu.vector_store %arg16[%173, %c0_82, %c0_83], %176 {strides = array<i32>} : memref<4x8x32xf32, #tpu.memory_space<vmem>>, vector<1x8x32xf32>,
    %c4_i32 = arith.constant 4 : i32
    %c0_84 = arith.constant 0 : index
    %c0_85 = arith.constant 0 : index
    %177 = vector.load %arg12[%c0_84, %c0_85] : memref<8x32xf32, #tpu.memory_space<vmem>>, vector<8x32xf32>
    tpu.vector_store %arg12[%c0_84, %c0_85], %172 {strides = array<i32>} : memref<8x32xf32, #tpu.memory_space<vmem>>, vector<8x32xf32>,
    %c0_86 = arith.constant 0 : index
    %c0_87 = arith.constant 0 : index
    %178 = vector.load %arg11[%c0_86, %c0_87] : memref<8x32xf32, #tpu.memory_space<vmem>>, vector<8x32xf32>
    tpu.vector_store %arg11[%c0_86, %c0_87], %172 {strides = array<i32>} : memref<8x32xf32, #tpu.memory_space<vmem>>, vector<8x32xf32>,
    %c0_88 = arith.constant 0 : index
    %c0_89 = arith.constant 0 : index
    %c0_90 = arith.constant 0 : index
    %179 = vector.load %arg16[%c0_88, %c0_89, %c0_90] : memref<4x8x32xf32, #tpu.memory_space<vmem>>, vector<4x8x32xf32>
    %180 = vector.shape_cast %179 : vector<4x8x32xf32> to vector<32x32xf32>
    %c0_91 = arith.constant 0 : index
    %c0_92 = arith.constant 0 : index
    %181 = vector.load %arg8[%c0_91, %c0_92] : memref<32x1xf32, #tpu.memory_space<vmem>>, vector<32x1xf32>
    %cst_93 = arith.constant dense<0.000000e+00> : vector<32x1xf32>
    %182 = tpu.matmul %180, %181, %cst_93 {dimension_numbers = #tpu.dot_dimension_numbers<[1], [0], [0], [1], [0, 0, 1, 1], [], []>} : vector<32x32xf32>, vector<32x1xf32>, vector<32x1xf32> -> vector<32x1xf32>
    %c0_94 = arith.constant 0 : index
    %c0_95 = arith.constant 0 : index
    %183 = vector.load %arg9[%c0_94, %c0_95] : memref<1x1xf32, #tpu.memory_space<vmem>>, vector<1x1xf32>
    %184 = vector.broadcast %183 : vector<1x1xf32> to vector<32x1xf32>
    %185 = arith.addf %182, %184 : vector<32x1xf32>
    %186 = vector.shape_cast %185 : vector<32x1xf32> to vector<4x8x1xf32>
    %c0_96 = arith.constant 0 : index
    %c0_97 = arith.constant 0 : index
    %c0_98 = arith.constant 0 : index
    %187 = vector.load %arg10[%c0_96, %c0_97, %c0_98] : memref<4x8x1xf32, #tpu.memory_space<vmem>>, vector<4x8x1xf32>
    tpu.vector_store %arg10[%c0_96, %c0_97, %c0_98], %186 {strides = array<i32>} : memref<4x8x1xf32, #tpu.memory_space<vmem>>, vector<4x8x1xf32>,
    return
  }
  func.func @transform_0(%arg0: i32, %arg1: i32) -> (i32, i32, i32) {
    %c0_i32 = arith.constant 0 : i32
    %c0_i32_0 = arith.constant 0 : i32
    return %arg1, %arg0, %c0_i32 : i32, i32, i32
  }
  func.func @transform_1(%arg0: i32, %arg1: i32) -> (i32, i32) {
    %c0_i32 = arith.constant 0 : i32
    %c0_i32_0 = arith.constant 0 : i32
    return %arg0, %c0_i32 : i32, i32
  }
  func.func @transform_2(%arg0: i32, %arg1: i32) -> (i32, i32) {
    %c0_i32 = arith.constant 0 : i32
    %c0_i32_0 = arith.constant 0 : i32
    %c0_i32_1 = arith.constant 0 : i32
    return %c0_i32, %c0_i32_0 : i32, i32
  }
  func.func @transform_3(%arg0: i32, %arg1: i32) -> (i32, i32) {
    %c0_i32 = arith.constant 0 : i32
    %c0_i32_0 = arith.constant 0 : i32
    %c0_i32_1 = arith.constant 0 : i32
    return %c0_i32, %c0_i32_0 : i32, i32
  }
  func.func @transform_4(%arg0: i32, %arg1: i32) -> (i32, i32, i32) {
    %c0_i32 = arith.constant 0 : i32
    %c0_i32_0 = arith.constant 0 : i32
    %c0_i32_1 = arith.constant 0 : i32
    %c0_i32_2 = arith.constant 0 : i32
    return %c0_i32, %c0_i32_0, %c0_i32_1 : i32, i32, i32
  }
  func.func @transform_5(%arg0: i32, %arg1: i32) -> (i32, i32) {
    %c0_i32 = arith.constant 0 : i32
    %c0_i32_0 = arith.constant 0 : i32
    %c0_i32_1 = arith.constant 0 : i32
    return %c0_i32, %c0_i32_0 : i32, i32
  }
  func.func @transform_6(%arg0: i32, %arg1: i32) -> (i32, i32) {
    %c0_i32 = arith.constant 0 : i32
    %c0_i32_0 = arith.constant 0 : i32
    %c0_i32_1 = arith.constant 0 : i32
    return %c0_i32, %c0_i32_0 : i32, i32
  }
  func.func @transform_7(%arg0: i32, %arg1: i32) -> (i32, i32) {
    %c0_i32 = arith.constant 0 : i32
    %c0_i32_0 = arith.constant 0 : i32
    %c0_i32_1 = arith.constant 0 : i32
    return %c0_i32, %c0_i32_0 : i32, i32
  }
  func.func @transform_8(%arg0: i32, %arg1: i32) -> (i32, i32, i32) {
    %c0_i32 = arith.constant 0 : i32
    %c0_i32_0 = arith.constant 0 : i32
    return %arg1, %arg0, %c0_i32 : i32, i32, i32
  }
  func.func @transform_9(%arg0: i32, %arg1: i32) -> (i32, i32) {
    %c0_i32 = arith.constant 0 : i32
    %c0_i32_0 = arith.constant 0 : i32
    return %arg0, %c0_i32 : i32, i32
  }
}

</mosaic_0001>

<bundles_post_ra>
// kernel: rnn_regressor_forward.1
= control target key start
LH: loop header
LB: loop body
LE: loop exit
PB: predicated region body
PF: predicated region fallthrough
CT: control target
= control target key end

     0   :  { %s2297_s11 = smov 0   ;;  %s2299_s12 = smov 0   ;;  %s2543_s0 = inlined_call_operand.vmem [shape: f32[8,8,4], index: 0, kind: input, shape index: {}]   ;;  %s2544_s1 = inlined_call_operand.vmem [shape: f32[8,32], index: 1, kind: input, shape index: {}]   ;;  %s2545_s2 = inlined_call_operand.vmem [shape: f32[4,96], index: 2, kind: input, shape index: {}]   ;;  %s2546_s3 = inlined_call_operand.vmem [shape: f32[1,96], index: 3, kind: input, shape index: {}]   ;;  %s2547_s4 = inlined_call_operand.vmem [shape: f32[3,32,32], index: 4, kind: input, shape index: {}]   ;;  %s2548_s5 = inlined_call_operand.vmem [shape: f32[1,32], index: 5, kind: input, shape index: {}]   ;;  %s2549_s6 = inlined_call_operand.vmem [shape: f32[32,1], index: 6, kind: input, shape index: {}]   ;;  %s2550_s7 = inlined_call_operand.<no memory space> [shape: f32[1,1], index: 7, kind: input, shape index: {}]   ;;  %s2551_s8 = inlined_call_operand.vmem [shape: f32[8,8,1], index: 8, kind: output, shape index: {0}]   ;;  %s2552_s9 = inlined_call_operand.vmem [shape: f32[8,32], index: 9, kind: output, shape index: {1}]  }
   0x1   :  { %v15_v0 = vstv %s2550_s7  ;;  %s2301_s13 = smov 0  }
   0x2   :  { %16 = vst [vmem:[#allocation7] sm:$0x1] %v15_v0 }
   0x3 LB: > { %s31_s7 = sadd.s32 1, %s2233_s12  ;;  %p1790_p0 = scmp.ge.s32.totalorder %s2237_s13, 1  ;;  %s2237_s13 = sphi %s2301_s13, %s22_s13   ;;  %s2233_s12 = sphi %s2299_s12, %s2554_s12   ;;  %s2229_s11 = sphi %s2297_s11, %s2553_s11  }
   0x4   : > { %p32_p1 = scmp.ge.s32.totalorder %s31_s7, 2  ;;  %p321_p2 = scmp.lt.s32.totalorder %s2237_s13, 3 }
   0x6   : > { %s2556_s7 = smov (%p32_p1, %s31_s7), 0  ;;  %p322_p3 = pnand %p1790_p0, %p321_p2 }
   0x7   : > { %s1791_s14 = sshll.u32 (!%p322_p3), %s2229_s11, 2  ;;  %p1795_p5 = scmp.ne.s32.totalorder (!%p322_p3), %s2229_s11, 0 }
   0x8   : > { %325 = sbr.rel (%p322_p3) target bundleno = 1398 (0x576), region = 52  ;;  %p372_p4 = scmp.lt.s32.totalorder (!%p322_p3), %s1791_s14, 7 }
   0xf   : > { %s2558_s14 = smov (!%p372_p4, %s1791_s14), 7  ;;  %400 = sbr.rel (%p1795_p5) target bundleno = 22 (0x16), region = 56 }
  0x10   : > { %s1792_s15 = sshll.u32 %s2558_s14, 3  ;;  %v401_v1 = vld [vmem:[%s2544_s1] sm:$0xff] (!%p1795_p5)  ;;  %vm402_vm0 = vcmask (!%p1795_p5), 261120  }
  0x11   : > { %s2318_s18 = scalar_lea.vmem %s2543_s0, %s1792_s15  ;;  %s2323_s21 = scalar_lea.vmem %s2551_s8, %s1792_s15  ;;  %403 = vst.msk [vmem:[#allocation2] sm:$0xff] (!%p1795_p5), %vm402_vm0, %v401_v1 }
  0x16 PF: > { %v408_v2 = vld [vmem:[%s2545_s2] sm:$0xf]  ;;  %vm429_vm1 = vcmask 1043456   ;;  %vm416_vm2 = vcmask 31744   ;;  %v405_v4 = vld [vmem:[%s2318_s18 + $0x8] sm:$0xff]  ;;  %v561_v7 = vld [vmem:[%s2547_s4 + $0x10] sm:$0xff] }
  0x17   : > { %v404_v3 = vld [vmem:[%s2318_s18] sm:$0xff]  ;;  %1912 = vmatprep.subr.msk.mxu1 %vm429_vm1, %v408_v2  ;;  %v560_v6 = vld [vmem:[%s2547_s4 + $0x8] sm:$0xff]  ;;  %v2239_v8 = vmov 0.0|0.0   ;;  %v562_v10 = vld [vmem:[%s2547_s4 + $0x18] sm:$0xff]  ;;  %vm2240_vm3 = vmmov 0   ;;  %v2241_v12 = vmov 0.0  }
  0x18   : > { %1914 = vmatprep.mubr.msk.f32.mxu1 %vm416_vm2, %v404_v3  ;;  %v559_v5 = vld [vmem:[%s2547_s4] sm:$0xff]  ;;  %1913 = vmatpush3.msk.msra.mxu1 %vm429_vm1, %v408_v2  ;;  %v1807_v13 = vld [vmem:[%s2547_s4 + $0x48] sm:$0xff]  ;;  %v406_v14 = vld [vmem:[%s2318_s18 + $0x10] sm:$0xff]  ;;  %v2360_v15 = vpack.c.bf16 %v562_v10, %v561_v7  ;;  %vm518_vm4 = vcmask 261120   ;;  %s2242_s15 = smov 96   ;;  %s2243_s16 = smov 64  }
  0x19   : > { %2066 = vmatprep.subr.bf16.mxu0 %v2239_v8  ;;  %v2344_v9 = vpack.c.bf16 %v560_v6, %v559_v5  ;;  %v1806_v11 = vld [vmem:[%s2547_s4 + $0x40] sm:$0xff]  ;;  %1915 = vmatmul.mubr.msk.f32.vlgmr.msra.gmra.mrb[0].mxu1 %vm416_vm2, %v405_v4  ;;  %v407_v17 = vld [vmem:[%s2318_s18 + $0x18] sm:$0xff]  ;;  %v1808_v18 = vld [vmem:[%s2547_s4 + $0x50] sm:$0xff]  ;;  %vm1659_vm5 = vcmask 7168  }
  0x1a   : > { %1928 = vmatprep.mubr.msk.f32.mxu0 %vm2240_vm3, %v2241_v12  ;;  %2078 = vmatprep.subr.bf16.mxu1 %v2239_v8  ;;  %v2363_v16 = vpack.c.bf16 %v1807_v13, %v1806_v11  ;;  %v1809_v19 = vld [vmem:[%s2547_s4 + $0x58] sm:$0xff]  ;;  %v1802_v20 = vld [vmem:[%s2547_s4 + $0x20] sm:$0xff]  ;;  %v1803_v21 = vld [vmem:[%s2547_s4 + $0x28] sm:$0xff] }
  0x1b   : > { %2068 = vmatpush3.bf16.msra.mxu0 %v2344_v9  ;;  %1917 = vmatprep.mubr.msk.f32.mxu1 %vm416_vm2, %v406_v14  ;;  %v2381_v22 = vpack.c.bf16 %v1809_v19, %v1808_v18  ;;  %v2386_v23 = vld [vmem:[#allocation2] sm:$0xff]  ;;  %v2390_v24 = vpack.c.bf16 %v1803_v21, %v1802_v20  ;;  %v1804_v25 = vld [vmem:[%s2547_s4 + $0x30] sm:$0xff]  ;;  %v1805_v26 = vld [vmem:[%s2547_s4 + $0x38] sm:$0xff] }
  0x1c   : > { %2069 = vmatprep.subr.bf16.mxu0 %v2239_v8  ;;  %2080 = vmatpush3.bf16.msra.mxu1 %v2363_v16  ;;  %v2404_v27 = vpack.c.bf16 %v1805_v26, %v1804_v25  ;;  %v1796_v28 = vld [vmem:[%s2546_s3] ss:$0 sm:$0xff] }
  0x1d   : > { %1918 = vmatmul.mubr.msk.f32.gmra.mrb[2].mxu1 %vm416_vm2, %v407_v17  ;;  %2081 = vmatprep.subr.bf16.mxu1 %v2239_v8  ;;  %v2437_v48 = vld [vmem:[%s2548_s5] ss:$0 sm:$0xff] }
  0x1e   : > { %1950 = vmatprep.mubr.msk.f32.mxu1 %vm2240_vm3, %v2241_v12 }
  0x1f   : > { %2071 = vmatpush3.bf16.msra.mxu0 %v2360_v15 }
  0x20   : > { %2072 = vmatprep.subr.bf16.mxu0 %v2239_v8  ;;  %2083 = vmatpush3.bf16.msra.mxu1 %v2381_v22 }
  0x21   : > { %2090 = vmatprep.subr.bf16.mxu1 %v2239_v8 }
  0x22   : > { %1929 = vmatmul.mubr.msk.f32.vlgmr.msra.gmra.mrb[0].mxu0 %vm518_vm4, %v2386_v23 }
  0x23   : > { %2074 = vmatpush3.bf16.msra.mxu0 %v2390_v24  ;;  %1939 = vmatprep.mubr.msk.f32.mxu0 %vm2240_vm3, %v2241_v12 }
  0x24   : > { %1951 = vmatmul.mubr.msk.f32.vlgmr.msra.gmra.mrb[4].mxu1 %vm518_vm4, %v2386_v23  ;;  %2075 = vmatprep.subr.bf16.mxu0 %v2239_v8 }
  0x25   : > { %2092 = vmatpush3.bf16.msra.mxu1 %v2390_v24  ;;  %1972 = vmatprep.mubr.msk.f32.mxu1 %vm2240_vm3, %v2241_v12 }
  0x26   : > { %2093 = vmatprep.subr.bf16.mxu1 %v2239_v8 }
  0x27   : > { %2077 = vmatpush3.bf16.msra.mxu0 %v2404_v27 }
  0x28   : > { %2084 = vmatprep.subr.bf16.mxu0 %v2239_v8 }
  0x29   : > { %2095 = vmatpush3.bf16.msra.mxu1 %v2404_v27 }
  0x2a   : > { %1940 = vmatmul.mubr.msk.f32.vlgmr.msra.gmra.mrb[2].mxu0 %vm518_vm4, %v2386_v23  ;;  %2102 = vmatprep.subr.bf16.mxu1 %v2239_v8 }
  0x2b   : > { %2086 = vmatpush3.bf16.msra.mxu0 %v2344_v9  ;;  %1961 = vmatprep.mubr.msk.f32.mxu0 %vm2240_vm3, %v2241_v12 }
  0x2c   : > { %2087 = vmatprep.subr.bf16.mxu0 %v2239_v8 }
  0x2f   : > { %2089 = vmatpush3.bf16.msra.mxu0 %v2360_v15 }
  0x30   : > { %2096 = vmatprep.subr.bf16.mxu0 %v2239_v8 }
  0xec   : > { %v1916_v29 = vpop.f32.mrb[0].mxu1 }
  0xed   : > { %v505_v30 = vadd.f32 %v1916_v29, %v1796_v28  ;;  %v499_v31 = vpop.f32.mrb[1].mxu1 }
  0xee   : > { %v500_v32 = vadd.f32 %v1796_v28, %v499_v31 }
  0xef   : > { %520 = vst.msk [vmem:[#allocation3 + $0x8] sm:$0xff] %vm518_vm4, %v505_v30  ;;  %529 = vrot.lane.b32.xlu1 %v505_v30, %s2242_s15 }
  0xf0   : > { %519 = vst.msk [vmem:[#allocation3] sm:$0xff] %vm518_vm4, %v500_v32  ;;  %527 = vrot.lane.b32.xlu0 %v500_v32, %s2242_s15  ;;  %v1919_v33 = vpop.f32.mrb[2].mxu1 }
  0xf1   : > { %v515_v34 = vadd.f32 %v1919_v33, %v1796_v28  ;;  %v509_v35 = vpop.f32.mrb[3].mxu1 }
  0xf2   : > { %v510_v36 = vadd.f32 %v1796_v28, %v509_v35 }
  0xf3   : > { %545 = vrot.lane.b32.xlu1 %v505_v30, %s2243_s16  ;;  %522 = vst.msk [vmem:[#allocation3 + $0x18] sm:$0xff] %vm518_vm4, %v515_v34 }
  0xf4   : > { %543 = vrot.lane.b32.xlu0 %v500_v32, %s2243_s16  ;;  %521 = vst.msk [vmem:[#allocation3 + $0x10] sm:$0xff] %vm518_vm4, %v510_v36 }
  0xf5   : > { %v650_v37 = vpop.f32.mrb[0].mxu0 }
  0xf6   : > { %v1930_v38 = vpop.f32.mrb[1].mxu0  ;;  %v1033_v13 = vld [vmem:[#allocation3 + $0x8] sm:$0xff] }
  0xf7   : > { %v790_v39 = vpop.f32.mrb[4].mxu1  ;;  %v794_v40 = vld [vmem:[#allocation3] sm:$0xff]  ;;  %547 = vrot.lane.b32.xlu1 %v510_v36, %s2243_s16 }
  0xf8   : > { %v1952_v41 = vpop.f32.mrb[5].mxu1  ;;  %v795_v42 = vadd.f32 %v794_v40, %v650_v37  ;;  %531 = vrot.lane.b32.xlu0 %v510_v36, %s2242_s15  ;;  %v791_v49 = vadd.f32 %v2437_v48, %v790_v39 }
  0xfa   : > { %v1814_v43 = vmul.f32 -1.442695, %v795_v42 }
  0xfb   : > { %549 = vrot.lane.b32.xlu1 %v515_v34, %s2243_s16 }
  0xfc   : > { %2175 = vpow2.f32 %v1814_v43  ;;  %533 = vrot.lane.b32.xlu0 %v515_v34, %s2242_s15 }
  0xfd   : > { %v720_v44 = vpop.f32.mrb[2].mxu0 }
  0xfe   : > { %v1941_v45 = vpop.f32.mrb[3].mxu0 }
 0x106   : > { %v2176_v46 = vpop.eup %2175 }
 0x107   : > { %v799_v47 = vadd.f32 1.0, %v2176_v46  ;;  %v1275_v46 = vld [vmem:[#allocation3 + $0x10] sm:$0xff] }
 0x109   : > { %2177 = vrcp.f32 %v799_v47 }
 0x113   : > { %v2178_v50 = vpop.eup %2177 }
 0x114   : > { %v811_v51 = vmul.f32 %v2178_v50, %v791_v49 }
 0x161   : > { %v530_v52 = vpop.permute.xlu1 %529 }
 0x162   : > { %540 = vst.msk [vmem:[#allocation4 + $0x8] sm:$0xff] %vm518_vm4, %v530_v52  ;;  %v528_v53 = vpop.permute.xlu0 %527 }
 0x163   : > { %539 = vst.msk [vmem:[#allocation4] sm:$0xff] %vm518_vm4, %v528_v53 }
 0x165   : > { %v546_v54 = vpop.permute.xlu1 %545 }
 0x166   : > { %556 = vst.msk [vmem:[#allocation5 + $0x8] sm:$0xff] %vm518_vm4, %v546_v54  ;;  %v544_v55 = vpop.permute.xlu0 %543 }
 0x167   : > { %555 = vst.msk [vmem:[#allocation5] sm:$0xff] %vm518_vm4, %v544_v55 }
 0x169   : > { %v548_v56 = vpop.permute.xlu1 %547  ;;  %v1042_v21 = vld [vmem:[#allocation4 + $0x8] sm:$0xff] }
 0x16a   : > { %v802_v57 = vld [vmem:[#allocation4] sm:$0xff]  ;;  %557 = vst.msk [vmem:[#allocation5 + $0x10] sm:$0xff] %vm518_vm4, %v548_v56  ;;  %v532_v58 = vpop.permute.xlu0 %531 }
 0x16b   : > { %v803_v59 = vadd.f32 %v802_v57, %v720_v44  ;;  %541 = vst.msk [vmem:[#allocation4 + $0x10] sm:$0xff] %vm518_vm4, %v532_v58 }
 0x16d   : > { %v1815_v60 = vmul.f32 -1.442695, %v803_v59  ;;  %v550_v61 = vpop.permute.xlu1 %549  ;;  %v1051_v36 = vld [vmem:[#allocation5 + $0x8] sm:$0xff] }
 0x16e   : > { %558 = vst.msk [vmem:[#allocation5 + $0x18] sm:$0xff] %vm518_vm4, %v550_v61  ;;  %v534_v62 = vpop.permute.xlu0 %533  ;;  %v810_v63 = vld [vmem:[#allocation5] sm:$0xff] }
 0x16f   : > { %2179 = vpow2.f32 %v1815_v60  ;;  %542 = vst.msk [vmem:[#allocation4 + $0x18] sm:$0xff] %vm518_vm4, %v534_v62  ;;  %v812_v2 = vadd.f32 %v811_v51, %v810_v63 }
 0x171   : > { %v1293_v63 = vld [vmem:[#allocation5 + $0x10] sm:$0xff] }
 0x172   : > { %v1284_v52 = vld [vmem:[#allocation4 + $0x10] sm:$0xff] }
 0x179   : > { %v2180_v0 = vpop.eup %2179 }
 0x17a   : > { %v807_v1 = vadd.f32 1.0, %v2180_v0 }
 0x17c   : > { %2181 = vrcp.f32 %v807_v1 }
 0x17d   : > { %2183 = vtanh.f32 %v812_v2 }
 0x186   : > { %v2182_v3 = vpop.eup %2181 }
 0x187   : > { %v814_v4 = vsub.f32 1.0, %v2182_v3  ;;  %v2184_v5 = vpop.eup %2183  ;;  %v816_v7 = vmul.f32 %v2182_v3, %v2386_v23 }
 0x189   : > { %v815_v6 = vmul.f32 %v2184_v5, %v814_v4 }
 0x18b   : > { %v817_v10 = vadd.f32 %v816_v7, %v815_v6  ;;  %v1553_v6 = vld [vmem:[%s2549_s6 + $0x10] sm:$0xff]  ;;  %v1554_v7 = vld [vmem:[%s2549_s6 + $0x18] sm:$0xff] }
 0x18d   : > { %818 = vst.msk [vmem:[#allocation6] sm:$0xff] %vm518_vm4, %v817_v10  ;;  %1962 = vmatmul.mubr.msk.f32.vlgmr.msra.gmra.mrb[4].mxu0 %vm518_vm4, %v817_v10  ;;  %1973 = vmatmul.mubr.msk.f32.vlgmr.msra.gmra.mrb[6].mxu1 %vm518_vm4, %v817_v10 }
 0x18e   : > { %2098 = vmatpush3.bf16.msra.mxu0 %v2363_v16  ;;  %1983 = vmatprep.mubr.msk.f32.mxu0 %vm2240_vm3, %v2241_v12 }
 0x18f   : > { %2099 = vmatprep.subr.bf16.mxu0 %v2239_v8  ;;  %2104 = vmatpush3.bf16.msra.mxu1 %v2344_v9 }
 0x190   : > { %2105 = vmatprep.subr.bf16.mxu1 %v2239_v8  ;;  %1994 = vmatprep.mubr.msk.f32.mxu1 %vm2240_vm3, %v2241_v12 }
 0x192   : > { %2101 = vmatpush3.bf16.msra.mxu0 %v2381_v22 }
 0x193   : > { %2108 = vmatprep.subr.bf16.mxu0 %v2239_v8  ;;  %2107 = vmatpush3.bf16.msra.mxu1 %v2360_v15 }
 0x194   : > { %2114 = vmatprep.subr.bf16.mxu1 %v2239_v8 }
 0x195   : > { %1984 = vmatmul.mubr.msk.f32.vlgmr.msra.gmra.mrb[6].mxu0 %vm518_vm4, %v817_v10 }
 0x196   : > { %2110 = vmatpush3.bf16.msra.mxu0 %v2390_v24  ;;  %2005 = vmatprep.mubr.msk.f32.mxu0 %vm2240_vm3, %v2241_v12 }
 0x197   : > { %2111 = vmatprep.subr.bf16.mxu0 %v2239_v8 }
 0x19a   : > { %2113 = vmatpush3.bf16.msra.mxu0 %v2404_v27 }
 0x19b   : > { %2120 = vmatprep.subr.bf16.mxu0 %v2239_v8 }
 0x260   : > { %v888_v11 = vpop.f32.mrb[4].mxu0  ;;  %v958_v14 = vpop.f32.mrb[6].mxu1 }
 0x261   : > { %v1034_v17 = vadd.f32 %v1033_v13, %v888_v11  ;;  %v1963_v18 = vpop.f32.mrb[5].mxu0  ;;  %v1974_v19 = vpop.f32.mrb[7].mxu1  ;;  %v1043_v23 = vadd.f32 %v1042_v21, %v958_v14  ;;  %v2142_v11 = vpack.c.bf16 %v1554_v7, %v1553_v6  ;;  %v1547_v13 = vld [vmem:[#allocation6] sm:$0xff] }
 0x262   : > { %v1517_v18 = vld [vmem:[#allocation3 + $0x18] sm:$0xff] }
 0x263   : > { %v1819_v20 = vmul.f32 -1.442695, %v1034_v17  ;;  %v1820_v25 = vmul.f32 -1.442695, %v1043_v23  ;;  %v1526_v23 = vld [vmem:[#allocation4 + $0x18] sm:$0xff] }
 0x265   : > { %2185 = vpow2.f32 %v1819_v20 }
 0x266   : > { %2187 = vpow2.f32 %v1820_v25  ;;  %v1831_v25 = vld [vmem:[#allocation7] ss:$0 sm:$0xff] }
 0x268   : > { %v1028_v26 = vpop.f32.mrb[6].mxu0 }
 0x269   : > { %v1985_v28 = vpop.f32.mrb[7].mxu0  ;;  %v1029_v33 = vadd.f32 %v2437_v48, %v1028_v26 }
 0x26f   : > { %v2186_v29 = vpop.eup %2185 }
 0x270   : > { %v1038_v30 = vadd.f32 1.0, %v2186_v29  ;;  %v2188_v31 = vpop.eup %2187 }
 0x271   : > { %v1047_v32 = vadd.f32 1.0, %v2188_v31 }
 0x272   : > { %2189 = vrcp.f32 %v1038_v30 }
 0x273   : > { %2191 = vrcp.f32 %v1047_v32 }
 0x27c   : > { %v2190_v34 = vpop.eup %2189 }
 0x27d   : > { %v1052_v35 = vmul.f32 %v2190_v34, %v1029_v33  ;;  %v2192_v38 = vpop.eup %2191 }
 0x27e   : > { %v1055_v39 = vsub.f32 1.0, %v2192_v38  ;;  %v1057_v42 = vmul.f32 %v2192_v38, %v817_v10 }
 0x27f   : > { %v1053_v37 = vadd.f32 %v1052_v35, %v1051_v36 }
 0x281   : > { %2193 = vtanh.f32 %v1053_v37 }
 0x28b   : > { %v2194_v40 = vpop.eup %2193 }
 0x28c   : > { %v1056_v41 = vmul.f32 %v2194_v40, %v1055_v39 }
 0x28e   : > { %v1058_v43 = vadd.f32 %v1057_v42, %v1056_v41  ;;  %v1535_v41 = vld [vmem:[#allocation5 + $0x18] sm:$0xff] }
 0x290   : > { %1060 = vst.msk [vmem:[#allocation6 + $0x8] sm:$0xff] %vm518_vm4, %v1058_v43  ;;  %1995 = vmatmul.mubr.msk.f32.vlgmr.msra.gmra.mrb[8].mxu1 %vm518_vm4, %v1058_v43  ;;  %2006 = vmatmul.mubr.msk.f32.vlgmr.msra.gmra.mrb[8].mxu0 %vm518_vm4, %v1058_v43 }
 0x291   : > { %2116 = vmatpush3.bf16.msra.mxu1 %v2363_v16  ;;  %2016 = vmatprep.mubr.msk.f32.mxu1 %vm2240_vm3, %v2241_v12 }
 0x292   : > { %2117 = vmatprep.subr.bf16.mxu1 %v2239_v8  ;;  %2122 = vmatpush3.bf16.msra.mxu0 %v2344_v9  ;;  %v1551_v9 = vld [vmem:[%s2549_s6] sm:$0xff] }
 0x293   : > { %2123 = vmatprep.subr.bf16.mxu0 %v2239_v8  ;;  %2027 = vmatprep.mubr.msk.f32.mxu0 %vm2240_vm3, %v2241_v12 }
 0x295   : > { %2119 = vmatpush3.bf16.msra.mxu1 %v2381_v22 }
 0x296   : > { %2126 = vmatprep.subr.bf16.mxu1 %v2239_v8  ;;  %2125 = vmatpush3.bf16.msra.mxu0 %v2360_v15  ;;  %v1552_v15 = vld [vmem:[%s2549_s6 + $0x8] sm:$0xff] }
 0x297   : > { %2132 = vmatprep.subr.bf16.mxu0 %v2239_v8  ;;  %v2138_v44 = vpack.c.bf16 %v1552_v15, %v1551_v9  ;;  %v1548_v14 = vld [vmem:[#allocation6 + $0x8] sm:$0xff] }
 0x298   : > { %2017 = vmatmul.mubr.msk.f32.vlgmr.msra.gmra.mrb[10].mxu1 %vm518_vm4, %v1058_v43 }
 0x299   : > { %2128 = vmatpush3.bf16.msra.mxu1 %v2390_v24  ;;  %2038 = vmatprep.mubr.msk.f32.mxu1 %vm2240_vm3, %v2241_v12 }
 0x29a   : > { %2129 = vmatprep.subr.bf16.mxu1 %v2239_v8 }
 0x29d   : > { %2131 = vmatpush3.bf16.msra.mxu1 %v2404_v27 }
 0x29e   : > { %2139 = vmatprep.subr.bf16.mxu1 %v2138_v44 }
 0x363   : > { %v1130_v45 = vpop.f32.mrb[8].mxu1  ;;  %v1200_v24 = vpop.f32.mrb[8].mxu0 }
 0x364   : > { %v1276_v47 = vadd.f32 %v1275_v46, %v1130_v45  ;;  %v1996_v49 = vpop.f32.mrb[9].mxu1  ;;  %v2007_v50 = vpop.f32.mrb[9].mxu0  ;;  %v1285_v53 = vadd.f32 %v1284_v52, %v1200_v24 }
 0x366   : > { %v1824_v51 = vmul.f32 -1.442695, %v1276_v47  ;;  %v1825_v27 = vmul.f32 -1.442695, %v1285_v53 }
 0x368   : > { %2195 = vpow2.f32 %v1824_v51 }
 0x369   : > { %2197 = vpow2.f32 %v1825_v27 }
 0x36b   : > { %v1270_v54 = vpop.f32.mrb[10].mxu1 }
 0x36c   : > { %v2018_v55 = vpop.f32.mrb[11].mxu1  ;;  %v1271_v60 = vadd.f32 %v2437_v48, %v1270_v54 }
 0x372   : > { %v2196_v56 = vpop.eup %2195 }
 0x373   : > { %v1280_v57 = vadd.f32 1.0, %v2196_v56  ;;  %v2198_v58 = vpop.eup %2197 }
 0x374   : > { %v1289_v59 = vadd.f32 1.0, %v2198_v58 }
 0x375   : > { %2199 = vrcp.f32 %v1280_v57 }
 0x376   : > { %2201 = vrcp.f32 %v1289_v59 }
 0x37f   : > { %v2200_v61 = vpop.eup %2199 }
 0x380   : > { %v1294_v62 = vmul.f32 %v2200_v61, %v1271_v60  ;;  %v2202_v1 = vpop.eup %2201 }
 0x381   : > { %v1297_v2 = vsub.f32 1.0, %v2202_v1  ;;  %v1299_v5 = vmul.f32 %v2202_v1, %v1058_v43 }
 0x382   : > { %v1295_v0 = vadd.f32 %v1294_v62, %v1293_v63 }
 0x384   : > { %2203 = vtanh.f32 %v1295_v0 }
 0x38e   : > { %v2204_v3 = vpop.eup %2203 }
 0x38f   : > { %v1298_v4 = vmul.f32 %v2204_v3, %v1297_v2 }
 0x391   : > { %v1300_v10 = vadd.f32 %v1299_v5, %v1298_v4 }
 0x393   : > { %1302 = vst.msk [vmem:[#allocation6 + $0x10] sm:$0xff] %vm518_vm4, %v1300_v10  ;;  %2028 = vmatmul.mubr.msk.f32.vlgmr.msra.gmra.mrb[10].mxu0 %vm518_vm4, %v1300_v10  ;;  %2039 = vmatmul.mubr.msk.f32.vlgmr.msra.gmra.mrb[12].mxu1 %vm518_vm4, %v1300_v10 }
 0x394   : > { %2134 = vmatpush3.bf16.msra.mxu0 %v2363_v16  ;;  %2141 = vmatpush3.bf16.msra.mxu1 %v2138_v44 }
 0x395   : > { %2060 = vmatprep.mubr.msk.f32.mxu1 %vm518_vm4, %v1547_v13  ;;  %2135 = vmatprep.subr.bf16.mxu0 %v2239_v8 }
 0x396   : > { %2143 = vmatprep.subr.bf16.mxu1 %v2142_v11  ;;  %2049 = vmatprep.mubr.msk.f32.mxu0 %vm2240_vm3, %v2241_v12 }
 0x398   : > { %2137 = vmatpush3.bf16.msra.mxu0 %v2381_v22  ;;  %2145 = vmatpush3.bf16.msra.mxu1 %v2142_v11 }
 0x39a   : > { %v1549_v17 = vld [vmem:[#allocation6 + $0x10] sm:$0xff] }
 0x39b   : > { %2050 = vmatmul.mubr.msk.f32.vlgmr.msra.gmra.mrb[12].mxu0 %vm518_vm4, %v1300_v10  ;;  %2061 = vmatmul.mubr.msk.f32.vlgmr.msra.gmra.mrb[14].mxu1 %vm518_vm4, %v1548_v14 }
 0x39c   : > { %2063 = vmatprep.mubr.msk.f32.mxu1 %vm518_vm4, %v1549_v17 }
 0x466   : > { %v1372_v16 = vpop.f32.mrb[10].mxu0  ;;  %v1442_v19 = vpop.f32.mrb[12].mxu1 }
 0x467   : > { %v1518_v20 = vadd.f32 %v1517_v18, %v1372_v16  ;;  %v2029_v8 = vpop.f32.mrb[11].mxu0  ;;  %v2040_v21 = vpop.f32.mrb[13].mxu1  ;;  %v1527_v22 = vadd.f32 %v1526_v23, %v1442_v19 }
 0x469   : > { %v1829_v12 = vmul.f32 -1.442695, %v1518_v20  ;;  %v1830_v26 = vmul.f32 -1.442695, %v1527_v22 }
 0x46b   : > { %2205 = vpow2.f32 %v1829_v12 }
 0x46c   : > { %2207 = vpow2.f32 %v1830_v26 }
 0x46e   : > { %v1512_v28 = vpop.f32.mrb[12].mxu0  ;;  %v2062_v29 = vpop.f32.mrb[14].mxu1 }
 0x46f   : > { %v2051_v30 = vpop.f32.mrb[13].mxu0  ;;  %v1640_v31 = vpop.f32.mrb[15].mxu1  ;;  %v1646_v33 = vadd.f32 %v2062_v29, %v1831_v25  ;;  %v1513_v38 = vadd.f32 %v2437_v48, %v1512_v28 }
 0x470   : > { %v1641_v32 = vadd.f32 %v1831_v25, %v1640_v31 }
 0x471   : > { %1661 = vst.msk [vmem:[%s2323_s21 + $0x8] sm:$0xff] %vm1659_vm5, %v1646_v33 }
 0x472   : > { %1660 = vst.msk [vmem:[%s2323_s21] sm:$0xff] %vm1659_vm5, %v1641_v32 }
 0x475   : > { %v2206_v34 = vpop.eup %2205 }
 0x476   : > { %v1522_v35 = vadd.f32 1.0, %v2206_v34  ;;  %v2208_v36 = vpop.eup %2207 }
 0x477   : > { %v1531_v37 = vadd.f32 1.0, %v2208_v36 }
 0x478   : > { %2209 = vrcp.f32 %v1522_v35 }
 0x479   : > { %2211 = vrcp.f32 %v1531_v37 }
 0x482   : > { %v2210_v39 = vpop.eup %2209 }
 0x483   : > { %v1536_v40 = vmul.f32 %v2210_v39, %v1513_v38  ;;  %v2212_v43 = vpop.eup %2211 }
 0x484   : > { %v1539_v9 = vsub.f32 1.0, %v2212_v43  ;;  %v1541_v44 = vmul.f32 %v2212_v43, %v1300_v10 }
 0x485   : > { %v1537_v42 = vadd.f32 %v1536_v40, %v1535_v41 }
 0x487   : > { %2213 = vtanh.f32 %v1537_v42 }
 0x491   : > { %v2214_v15 = vpop.eup %2213 }
 0x492   : > { %v1540_v45 = vmul.f32 %v2214_v15, %v1539_v9 }
 0x494   : > { %v1542_v46 = vadd.f32 %v1541_v44, %v1540_v45 }
 0x496   : > { %1544 = vst.msk [vmem:[#allocation6 + $0x18] sm:$0xff] %vm518_vm4, %v1542_v46  ;;  %1545 = vst.msk [vmem:[#allocation2] sm:$0xff] %vm518_vm4, %v1542_v46 }
 0x497   : > { %1546 = vst.msk [vmem:[%s2552_s9] sm:$0xff] %vm518_vm4, %v1542_v46 }
 0x49d   : > { %v1550_v48 = vld [vmem:[#allocation6 + $0x18] sm:$0xff] }
 0x49e   : > { %2064 = vmatmul.mubr.msk.f32.gmra.mrb[16].mxu1 %vm518_vm4, %v1550_v48 }
 0x571   : > { %v2065_v24 = vpop.f32.mrb[16].mxu1 }
 0x572   : > { %v1650_v47 = vpop.f32.mrb[17].mxu1  ;;  %v1656_v50 = vadd.f32 %v2065_v24, %v1831_v25 }
 0x573   : > { %v1651_v49 = vadd.f32 %v1831_v25, %v1650_v47 }
 0x574   : > { %1663 = vst.msk [vmem:[%s2323_s21 + $0x18] sm:$0xff] %vm1659_vm5, %v1656_v50 }
 0x575   : > { %1662 = vst.msk [vmem:[%s2323_s21 + $0x10] sm:$0xff] %vm1659_vm5, %v1651_v49 }
 0x576 PF: > { %s22_s13 = sadd.s32 1, %s2237_s13   ;;  %s2553_s11 = smov %s2233_s12 }
 0x577   : > { %p19_p6 = scmp.ge.s32.totalorder %s22_s13, 4   ;;  %s2554_s12 = smov %s2556_s7 }
 0x579   :  { %21 = sbr.rel (!%p19_p6) target bundleno = 3 (0x3), region = 115 }

</bundles_post_ra>
